<compile_context>
chip_gen: v6e
topology: v6e:2x2x1
jax: 0.10.0
libtpu: 0.0.40
codegen_flags: <defaults>
</compile_context>

<pallas_src>
import functools

import jax
import jax.numpy as jnp
from jax.experimental import pallas as pl
from jax.experimental.pallas import tpu as pltpu


def _filternorm_kernel(*refs, n, eps, has_std, has_mean, std_scalar, mean_scalar):
    """Normalize each batch row over all remaining axes.

    refs = (x_ref, [std_ref], [mean_ref], out_ref)
      x_ref / out_ref : (TB, R, 128)  or  (TB, N)
      std_ref         : (R, 128)      or  (1, N)   (shared across batch rows)
      mean_ref        : (R, 128)      or  (1, N)
    """
    x_ref = refs[0]
    i = 1
    std_ref = None
    mean_ref = None
    if has_std:
        std_ref = refs[i]
        i += 1
    if has_mean:
        mean_ref = refs[i]
        i += 1
    out_ref = refs[i]

    x = x_ref[...].astype(jnp.float32)
    axes = tuple(range(1, x.ndim))
    inv_n = jnp.float32(1.0 / n)

    # two-pass moments in f32; `d` is reused for the normalize so there is no
    # extra pass over x.
    u = jnp.sum(x, axis=axes, keepdims=True) * inv_n
    d = x - u
    var = jnp.sum(d * d, axis=axes, keepdims=True) * inv_n
    inv_sigma = jax.lax.rsqrt(var + jnp.float32(eps))          # EUP slot

    y = d * inv_sigma
    if has_std:
        y = y * std_ref[...].astype(jnp.float32)
    elif std_scalar != 1.0:
        y = y * jnp.float32(std_scalar)
    if has_mean:
        y = y + mean_ref[...].astype(jnp.float32)
    elif mean_scalar != 0.0:
        y = y + jnp.float32(mean_scalar)
    out_ref[...] = y.astype(out_ref.dtype)


def _vmem_capacity_bytes():
    try:
        cap = getattr(pltpu.get_tpu_info(), "vmem_capacity_bytes", None)
        if cap:
            return int(cap)
    except Exception:
        pass
    return 64 << 20          # conservative default (v7x per-TC VMEM)


def filter_norm(x, out_std=1.0, out_mean=0.0, *, eps=1e-12):
    """FilterNorm forward.  x: (B, C, H, W).

    out_std / out_mean may be python scalars (running_std/mean = False) or
    arrays broadcastable to (1, C, H, W) (running_std/mean = True).
    """
    B, C, H, W = x.shape
    N = C * H * W
    itemsize = jnp.dtype(x.dtype).itemsize

    has_std = not isinstance(out_std, (int, float))
    has_mean = not isinstance(out_mean, (int, float))
    std_scalar = 1.0 if has_std else float(out_std)
    mean_scalar = 0.0 if has_mean else float(out_mean)
    n_affine = int(has_std) + int(has_mean)

    lane_aligned = (N % 128 == 0)

    # ---------------- batch-tile size TB --------------------------------
    per_sample_bytes = N * itemsize
    target_block = 1 << 20                                   # ~1 MiB DMA blocks
    TB = max(1, min(B, target_block // max(per_sample_bytes, 1)))
    if B >= 2:                                               # >=2 parallel steps (v7x dual-TC)
        TB = min(TB, max(1, B // 2))

    # VMEM budget: never request the full physical VMEM (v7x = 64 MiB/TC).
    vmem_cap = _vmem_capacity_bytes()
    budget = int(vmem_cap * 0.75)
    per_row_ws = 4 * N * itemsize + 3 * N * 4                # dbl-buffered in/out + f32 temps
    fixed_ws = 2 * n_affine * N * itemsize + (4 << 20)
    TB = min(TB, max(1, (budget - fixed_ws) // max(per_row_ws, 1)))

    if lane_aligned:
        while B % TB:                                        # avoid ragged trailing batch blocks
            TB -= 1
    else:
        # 2-D (TB, N) blocks: the second-to-last block dim must be a multiple
        # of 8 or cover the whole batch.
        if B % 8 == 0 and TB >= 8:
            TB = (TB // 8) * 8
            while TB >= 8 and B % TB:
                TB -= 8
            if TB < 8:
                TB = B
        else:
            TB = B

    need = 4 * TB * N * itemsize + 2 * n_affine * N * itemsize + 3 * TB * N * 4 + (4 << 20)
    vmem_limit = int(min(budget, max(32 << 20, need)))

    # ---------------- layouts & specs -----------------------------------
    if lane_aligned:
        R = N // 128
        xr = x.reshape(B, R, 128)
        out_struct = jax.ShapeDtypeStruct((B, R, 128), x.dtype)
        x_spec = pl.BlockSpec((TB, R, 128), lambda b: (b, 0, 0))
        out_spec = pl.BlockSpec((TB, R, 128), lambda b: (b, 0, 0))
        aff_shape = (R, 128)
        aff_spec = pl.BlockSpec((R, 128), lambda b: (0, 0))
    else:
        xr = x.reshape(B, N)
        out_struct = jax.ShapeDtypeStruct((B, N), x.dtype)
        x_spec = pl.BlockSpec((TB, N), lambda b: (b, 0))
        out_spec = pl.BlockSpec((TB, N), lambda b: (b, 0))
        aff_shape = (1, N)
        aff_spec = pl.BlockSpec((1, N), lambda b: (0, 0))

    operands = [xr]
    in_specs = [x_spec]

    def _prep_affine(p):
        return jnp.broadcast_to(jnp.asarray(p, x.dtype), (1, C, H, W)).reshape(aff_shape)

    if has_std:
        operands.append(_prep_affine(out_std))
        in_specs.append(aff_spec)
    if has_mean:
        operands.append(_prep_affine(out_mean))
        in_specs.append(aff_spec)

    kernel = functools.partial(
        _filternorm_kernel, n=N, eps=eps,
        has_std=has_std, has_mean=has_mean,
        std_scalar=std_scalar, mean_scalar=mean_scalar)

    out = pl.pallas_call(
        kernel,
        out_shape=out_struct,
        grid=(B // TB,),
        in_specs=in_specs,
        out_specs=out_spec,
        compiler_params=pltpu.CompilerParams(
            dimension_semantics=("parallel",),
            vmem_limit_bytes=vmem_limit),
    )(*operands)

    return out.reshape(B, C, H, W)


def reference_filter_norm(x, out_std=1.0, out_mean=0.0, *, eps=1e-12):
    """Pure-JAX reference mirroring the PyTorch forward."""
    xf = x.astype(jnp.float32)
    u = jnp.mean(xf, axis=(1, 2, 3), keepdims=True)
    s = jnp.mean((xf - u) ** 2, axis=(1, 2, 3), keepdims=True)
    xn = (xf - u) / jnp.sqrt(s + eps)
    return (xn * out_std + out_mean).astype(x.dtype)


if __name__ == "__main__":
    key = jax.random.PRNGKey(0)
    kx1, ks, km, kx2, kx3 = jax.random.split(key, 5)

    # case 1: running_std=True, running_mean=True (per-position affine params),
    #         lane-aligned sample size (N = 1024).
    B, C, H, W = 2, 4, 16, 16
    x1 = jax.random.normal(kx1, (B, C, H, W), jnp.float32)
    out_std = 0.02 * jnp.ones((1, C, H, W), jnp.float32) \
        + 0.01 * jax.random.normal(ks, (1, C, H, W), jnp.float32)
    out_mean = 0.01 * jax.random.normal(km, (1, C, H, W), jnp.float32)
    y1 = jax.block_until_ready(filter_norm(x1, out_std, out_mean))
    r1 = reference_filter_norm(x1, out_std, out_mean)
    assert y1.shape == x1.shape
    assert jnp.allclose(y1, r1, atol=1e-4, rtol=1e-4), float(jnp.max(jnp.abs(y1 - r1)))

    # case 2: default scalars (running_std/mean = False) and a non-lane-aligned
    #         sample size (N = 300) -> ragged-tail path, no wrapper pad/slice.
    B2, C2, H2, W2 = 2, 3, 10, 10
    x2 = jax.random.normal(kx2, (B2, C2, H2, W2), jnp.float32)
    y2 = jax.block_until_ready(filter_norm(x2))
    r2 = reference_filter_norm(x2)
    assert y2.shape == x2.shape
    assert jnp.allclose(y2, r2, atol=1e-4, rtol=1e-4), float(jnp.max(jnp.abs(y2 - r2)))

    # case 3: larger batch to exercise the batch-tiled grid (TB > 1) and the
    #         non-default scalar-affine constant-fold path.
    B3, C3, H3, W3 = 8, 4, 16, 16
    x3 = jax.random.normal(kx3, (B3, C3, H3, W3), jnp.float32)
    y3 = jax.block_until_ready(filter_norm(x3, 2.0, 0.5))
    r3 = reference_filter_norm(x3, 2.0, 0.5)
    assert y3.shape == x3.shape
    assert jnp.allclose(y3, r3, atol=1e-4, rtol=1e-4), float(jnp.max(jnp.abs(y3 - r3)))

    print("KERNEL_OK")
</pallas_src>

<mosaic_0001>
module attributes {stable_mosaic.version = 11 : i64} {
  func.func @_filternorm_kernel(%arg0: i32, %arg1: memref<1x8x128xf32, #tpu.memory_space<vmem>>, %arg2: memref<8x128xf32, #tpu.memory_space<vmem>>, %arg3: memref<8x128xf32, #tpu.memory_space<vmem>>, %arg4: memref<1x8x128xf32, #tpu.memory_space<vmem>>) attributes {dimension_semantics = [#tpu.dimension_semantics<parallel>], iteration_bounds = array<i64: 2>, scalar_prefetch = 0 : i64, scratch_operands = 0 : i64, tpu.core_type = #tpu.core_type<tc>, window_params = [{transform_indices = @transform_0, window_bounds = array<i64: 1, 8, 128>}, {pipeline_mode = #tpu.pipeline_mode<synchronous>, transform_indices = @transform_1, window_bounds = array<i64: 8, 128>}, {pipeline_mode = #tpu.pipeline_mode<synchronous>, transform_indices = @transform_2, window_bounds = array<i64: 8, 128>}, {transform_indices = @transform_3, window_bounds = array<i64: 1, 8, 128>}]} {
    %c0 = arith.constant 0 : index
    %c0_0 = arith.constant 0 : index
    %c0_1 = arith.constant 0 : index
    %0 = vector.load %arg1[%c0, %c0_0, %c0_1] : memref<1x8x128xf32, #tpu.memory_space<vmem>>, vector<1x8x128xf32>
    %cst = arith.constant dense<0.000000e+00> : vector<1xf32>
    %1 = vector.multi_reduction <add>, %0, %cst [1, 2] : vector<1x8x128xf32> to vector<1xf32>
    %2 = vector.shape_cast %1 : vector<1xf32> to vector<1x1x1xf32>
    %cst_2 = arith.constant 9.765625E-4 : f32
    %3 = vector.broadcast %cst_2 : f32 to vector<1x1x1xf32>
    %4 = arith.mulf %2, %3 : vector<1x1x1xf32>
    %5 = vector.broadcast %4 : vector<1x1x1xf32> to vector<1x8x128xf32>
    %6 = arith.subf %0, %5 : vector<1x8x128xf32>
    %7 = arith.mulf %6, %6 : vector<1x8x128xf32>
    %cst_3 = arith.constant dense<0.000000e+00> : vector<1xf32>
    %8 = vector.multi_reduction <add>, %7, %cst_3 [1, 2] : vector<1x8x128xf32> to vector<1xf32>
    %9 = vector.shape_cast %8 : vector<1xf32> to vector<1x1x1xf32>
    %cst_4 = arith.constant 9.765625E-4 : f32
    %10 = vector.broadcast %cst_4 : f32 to vector<1x1x1xf32>
    %11 = arith.mulf %9, %10 : vector<1x1x1xf32>
    %cst_5 = arith.constant 9.99999996E-13 : f32
    %12 = vector.broadcast %cst_5 : f32 to vector<1x1x1xf32>
    %13 = arith.addf %11, %12 : vector<1x1x1xf32>
    %14 = math.rsqrt %13 : vector<1x1x1xf32>
    %15 = vector.broadcast %14 : vector<1x1x1xf32> to vector<1x8x128xf32>
    %16 = arith.mulf %6, %15 : vector<1x8x128xf32>
    %c0_6 = arith.constant 0 : index
    %c0_7 = arith.constant 0 : index
    %17 = vector.load %arg2[%c0_6, %c0_7] : memref<8x128xf32, #tpu.memory_space<vmem>>, vector<8x128xf32>
    %18 = vector.shape_cast %17 : vector<8x128xf32> to vector<1x8x128xf32>
    %19 = arith.mulf %16, %18 : vector<1x8x128xf32>
    %c0_8 = arith.constant 0 : index
    %c0_9 = arith.constant 0 : index
    %20 = vector.load %arg3[%c0_8, %c0_9] : memref<8x128xf32, #tpu.memory_space<vmem>>, vector<8x128xf32>
    %21 = vector.shape_cast %20 : vector<8x128xf32> to vector<1x8x128xf32>
    %22 = arith.addf %19, %21 : vector<1x8x128xf32>
    %c0_10 = arith.constant 0 : index
    %c0_11 = arith.constant 0 : index
    %c0_12 = arith.constant 0 : index
    %23 = vector.load %arg4[%c0_10, %c0_11, %c0_12] : memref<1x8x128xf32, #tpu.memory_space<vmem>>, vector<1x8x128xf32>
    tpu.vector_store %arg4[%c0_10, %c0_11, %c0_12], %22 {strides = array<i32>} : memref<1x8x128xf32, #tpu.memory_space<vmem>>, vector<1x8x128xf32>,
    return
  }
  func.func @transform_0(%arg0: i32) -> (i32, i32, i32) {
    %c0_i32 = arith.constant 0 : i32
    %c0_i32_0 = arith.constant 0 : i32
    %c0_i32_1 = arith.constant 0 : i32
    return %arg0, %c0_i32, %c0_i32_0 : i32, i32, i32
  }
  func.func @transform_1(%arg0: i32) -> (i32, i32) {
    %c0_i32 = arith.constant 0 : i32
    %c0_i32_0 = arith.constant 0 : i32
    %c0_i32_1 = arith.constant 0 : i32
    return %c0_i32, %c0_i32_0 : i32, i32
  }
  func.func @transform_2(%arg0: i32) -> (i32, i32) {
    %c0_i32 = arith.constant 0 : i32
    %c0_i32_0 = arith.constant 0 : i32
    %c0_i32_1 = arith.constant 0 : i32
    return %c0_i32, %c0_i32_0 : i32, i32
  }
  func.func @transform_3(%arg0: i32) -> (i32, i32, i32) {
    %c0_i32 = arith.constant 0 : i32
    %c0_i32_0 = arith.constant 0 : i32
    %c0_i32_1 = arith.constant 0 : i32
    return %arg0, %c0_i32, %c0_i32_0 : i32, i32, i32
  }
}

</mosaic_0001>

<bundles_post_ra>
// kernel: tpu_custom_call.1
= control target key start
LH: loop header
LB: loop body
LE: loop exit
PB: predicated region body
PF: predicated region fallthrough
CT: control target
= control target key end

     0   :  { %8 = vsyncpa [#allocation3], 0  ;;  %s771_s0 = inlined_call_operand.hbm [shape: f32[2,8,128], index: 0, kind: input, shape index: {}]   ;;  %s772_s1 = inlined_call_operand.hbm [shape: f32[8,128], index: 1, kind: input, shape index: {}]   ;;  %s773_s2 = inlined_call_operand.hbm [shape: f32[8,128], index: 2, kind: input, shape index: {}]   ;;  %s774_s3 = inlined_call_operand.hbm [shape: f32[2,8,128], index: 3, kind: output, shape index: {}]  }
   0x1   :  { %10 = vsyncpa [#allocation3 + $0x1], 0 }
   0x2   :  { %11 = vsyncpa [#allocation6], 0 }
   0x3   :  { %12 = vsyncpa [#allocation4], 0 }
   0x4   :  { %14 = vsyncpa [#allocation4 + $0x1], 0  ;;  %s602_s12 = smov 0   ;;  %s604_s13 = smov 0  }
   0x5   :  { %s606_s14 = smov 0   ;;  %s608_s15 = smov 0  }
   0x6 LB: > { %s623_s16 = sadd.s32 4294967295, %s576_s15   ;;  %s343_s17 = sadd.s32 4294967294, %s576_s15   ;;  %s576_s15 = sphi %s608_s15, %s796_s15   ;;  %s572_s14 = sphi %s606_s14, %s795_s14   ;;  %s568_s13 = sphi %s604_s13, %s794_s13   ;;  %s564_s12 = sphi %s602_s12, %s793_s12  }
   0x7   : > { %p40_p0 = scmp.ne.s32.totalorder %s568_s13, %s564_s12  ;;  %p775_p1 = scmp.eq.s32.totalorder %s623_s16, 0 }
   0x8   : > { %p112_p3 = scmp.eq.s32.totalorder %s343_s17, 1  ;;  %p344_p5 = scmp.ge.s32.totalorder %s576_s15, 1 }
   0x9   : > { %p632_p4 = por %p775_p1, %p40_p0  ;;  %p119_p7 = scmp.lt.s32.totalorder %s576_s15, 3 }
   0xa   : > { %p637_p6 = por %p112_p3, %p40_p0  ;;  %s578_s21 = smov [#allocation5]  }
   0xb   : > { %s779_s18 = scalar_select %p632_p4, 1, 0 }
   0xc   : > { %s780_s19 = scalar_select %p637_p6, 1, 0 }
   0xd   : > { %p642_p8 = pnand %p344_p5, %p119_p7  ;;  %s132_s22 = sshll.u32 %s578_s21, 4  ;;  %s133_s22 = int_to_ptr.vmem [resolvable:$true] %s132_s22 }
   0xe   : > { %s579_s23 = smov [#allocation7]   ;;  %s656_s26 = sadd.s32 1, %s576_s15  }
   0xf   : > { %s781_s20 = scalar_select %p642_p8, 1, 0 }
  0x10   : > { %p371_p10 = pneg %p642_p8  ;;  %s143_s24 = sshll.u32 %s579_s23, 4  ;;  %s144_s24 = int_to_ptr.vmem [resolvable:$true] %s143_s24 }
  0x11   : > { %s24_s27 = ssub.s32 %s576_s15, %s656_s26  ;;  %s439_s28 = scalar_lea.vmem %s133_s22, 128 }
  0x12   : > { %p651_p11 = pnand %p371_p10, %p775_p1  ;;  %p440_p13 = scmp.ne.s32.totalorder %s133_s22, %s439_s28 }
  0x13   : > { %p447_p5 = scmp.lt.s32.totalorder %s133_s22, %s133_s22  ;;  %p448_p7 = scmp.lt.s32.totalorder %s439_s28, %s439_s28 }
  0x14   : > { %p430_p12 = pneg %p651_p11 }
  0x15   : > { %p449_p10 = por %p448_p7, %p447_p5 }
  0x16   : > { %p442_p0 = pnand %p440_p13, %p430_p12 }
  0x18   : > { %p443_p3 = pneg %p442_p0 }
  0x1a   : > { %p450_p9 = pnand %p449_p10, %p443_p3 }
  0x1c   : > { %453 = shalt.err (!%p450_p9)
}
  0x1d   : > { %374 = dma.hbm_to_vmem [thread:$0]  (!%p651_p11), %s772_s1, 128, %s133_s22, [#allocation6]  }
  0x1e   : > { %s465_s4 = scalar_lea.vmem %s144_s24, 128  ;;  %p473_p13 = scmp.lt.s32.totalorder %s144_s24, %s144_s24 }
  0x1f   : > { %p466_p1 = scmp.ne.s32.totalorder %s144_s24, %s465_s4  ;;  %p474_p0 = scmp.lt.s32.totalorder %s465_s4, %s465_s4 }
  0x21   : > { %p468_p2 = pnand %p466_p1, %p430_p12  ;;  %p475_p4 = por %p474_p0, %p473_p13 }
  0x23   : > { %p469_p6 = pneg %p468_p2 }
  0x25   : > { %p476_p8 = pnand %p475_p4, %p469_p6 }
  0x27   : > { %479 = shalt.err (!%p476_p8)
}
  0x28   : > { %377 = dma.hbm_to_vmem [thread:$0]  (!%p651_p11), %s773_s2, 128, %s144_s24, [#allocation6]  }
  0x29   : > { %p25_p1 = scmp.eq.s32.totalorder %s24_s27, 0  ;;  %s27_s7 = sadd.s32 1, %s572_s14 }
  0x2a   : > { %p34_p2 = scmp.ne.s32.totalorder %s572_s14, %s568_s13  ;;  %p35_p4 = scmp.eq.s32.totalorder %s576_s15, 0 }
  0x2b   : > { %s683_s8 = scalar_select %p25_p1, %s572_s14, %s27_s7  }
  0x2c   : > { %p36_p6 = por %p35_p4, %p34_p2  ;;  %p783_p8 = scmp.eq.s32.totalorder %s623_s16, 1 }
  0x2d   : > { %p388_p12 = scmp.lt.s32.totalorder %s576_s15, 2  ;;  %s154_s10 = sand.u32 1, %s572_s14  }
  0x2e   : > { %p687_p9 = por %p783_p8, %p34_p2  ;;  %s348_s11 = sshll.u32 %s154_s10, 3 }
  0x2f   : > { %s349_s17 = sshll.u32 %s576_s15, 7  ;;  %s158_s24 = scalar_lea.vmem [#allocation2], %s348_s11 }
  0x30   : > { %s784_s9 = scalar_select %p687_p9, 1, 0 }
  0x31   : > { %s697_s23 = scalar_lea.hbm %s771_s0, %s349_s17  ;;  %s165_s25 = sshll.u32 %s158_s24, 4  ;;  %s166_s25 = int_to_ptr.vmem [resolvable:$true] %s165_s25 }
  0x32   : > { %p699_p11 = pnand %p388_p12, %p36_p6  ;;  %s155_s28 = scalar_lea.sflag [#allocation3], %s154_s10 }
  0x33   : > { %s480_s29 = scalar_lea.hbm %s697_s23, 128  ;;  %s485_s5 = scalar_lea.hbm %s771_s0, 256 }
  0x34   : > { %p481_p3 = scmp.ne.s32.totalorder %s697_s23, %s480_s29  ;;  %p482_p5 = pneg %p699_p11 }
  0x35   : > { %p486_p13 = scmp.lt.s32.totalorder %s697_s23, %s771_s0  ;;  %p487_p0 = scmp.lt.s32.totalorder %s485_s5, %s480_s29 }
  0x36   : > { %p483_p7 = pnand %p482_p5, %p481_p3 }
  0x37   : > { %p488_p1 = por %p487_p0, %p486_p13 }
  0x38   : > { %p484_p10 = pneg %p483_p7 }
  0x3a   : > { %p489_p2 = pnand %p488_p1, %p484_p10 }
  0x3c   : > { %492 = shalt.err (!%p489_p2)
}
  0x3d   : > { %s493_s11 = scalar_lea.vmem %s166_s25, 128  ;;  %s580_s10 = smov [#allocation2]  }
  0x3e   : > { %p494_p4 = scmp.ne.s32.totalorder %s166_s25, %s493_s11  ;;  %s498_s17 = sshll.u32 %s580_s10, 4  ;;  %s499_s17 = int_to_ptr.vmem [resolvable:$false] %s498_s17 }
  0x3f   : > { %s500_s21 = scalar_lea.vmem %s499_s17, 256  ;;  %p501_p12 = scmp.lt.s32.totalorder %s166_s25, %s499_s17 }
  0x40   : > { %p496_p6 = pnand %p494_p4, %p482_p5  ;;  %p502_p3 = scmp.lt.s32.totalorder %s500_s21, %s493_s11 }
  0x42   : > { %p497_p8 = pneg %p496_p6  ;;  %p503_p7 = por %p502_p3, %p501_p12 }
  0x44   : > { %p504_p9 = pnand %p503_p7, %p497_p8 }
  0x46   : > { %507 = shalt.err (!%p504_p9)
}
  0x47   : > { %381 = dma.hbm_to_vmem [thread:$0]  (!%p699_p11), %s697_s23, 128, %s166_s25, %s155_s28  }
  0x48   : > { %p786_p10 = scmp.ne.s32.totalorder %s781_s20, 0 }
  0x49   : > { %s720_s22 = sand.u32 (!%p786_p10), 1, %s568_s13   ;;  %p787_p5 = scmp.ne.s32.totalorder (!%p786_p10), %s779_s18, 0 }
  0x4a   : > { %174 = sbr.rel (%p786_p10) target bundleno = 427 (0x1ab), region = 32  ;;  %s351_s24 = sshll.u32 (!%p786_p10), %s720_s22, 3 }
  0x4b   : > { %s177_s29 = scalar_lea.sflag (!%p786_p10), [#allocation3], %s720_s22  ;;  %s180_s30 = scalar_lea.vmem (!%p786_p10), [#allocation2], %s351_s24 }
  0x4f   : > { %551 = dma.done.wait (%p787_p5), %s177_s29, 128  }
  0x50   : > { %553 = vsyncadd (%p787_p5), %s177_s29, 4294967168  ;;  %p788_p9 = scmp.eq.s32.totalorder %s623_s16, 0 }
  0x52   : > { %555 = dma.done.wait (%p788_p9), [#allocation6], 256   ;;  %p789_p11 = pmov %p788_p9 }
  0x53   : > { %v211_v0 = vld [vmem:[%s180_s30] sm:$0xff]  ;;  %v235_v21 = vld [vmem:[#allocation5] sm:$0xff]  ;;  %v237_v23 = vld [vmem:[#allocation7] sm:$0xff]  ;;  %s356_s18 = sshll.u32 %s623_s16, 7  ;;  %s210_s20 = scalar_lea.vmem [#allocation8], %s351_s24 }
  0x54   : > { %557 = vsyncadd (%p789_p11), [#allocation6], 4294967040  ;;  %212 = vadd.xlane.f32.xlu0 %v211_v0  ;;  %s254_s23 = sshll.u32 %s210_s20, 4  ;;  %s252_s28 = scalar_lea.hbm %s774_s3, %s356_s18  ;;  %s255_s23 = int_to_ptr.vmem [resolvable:$true] %s254_s23 }
  0x55   : > { %s241_s4 = scalar_lea.sflag [#allocation4], %s720_s22  ;;  %s508_s5 = scalar_lea.vmem %s255_s23, 128 }
  0x56   : > { %p509_p13 = scmp.ne.s32.totalorder %s255_s23, %s508_s5  ;;  %p790_p0 = scmp.ne.s32.totalorder %s784_s9, 0 }
  0x57   : > { %s581_s6 = smov [#allocation8]  }
  0x58   : > { %p510_p1 = pnand %p509_p13, %p790_p0  ;;  %s512_s7 = sshll.u32 %s581_s6, 4  ;;  %s513_s7 = int_to_ptr.vmem [resolvable:$false] %s512_s7 }
  0x59   : > { %s514_s16 = scalar_lea.vmem %s513_s7, 256  ;;  %p515_p4 = scmp.lt.s32.totalorder %s255_s23, %s513_s7 }
  0x5a   : > { %p511_p2 = pneg %p510_p1  ;;  %p516_p6 = scmp.lt.s32.totalorder %s514_s16, %s508_s5 }
  0x5c   : > { %p517_p8 = por %p516_p6, %p515_p4 }
  0x5e   : > { %p518_p12 = pnand %p517_p8, %p511_p2 }
  0xdd   : > { %v213_v1 = vpop.xlane.xlu0 %212 }
  0xde   : > { %v214_v2 = vrot.slane %v213_v1, 4 }
  0xe0   : > { %v215_v3 = vadd.f32 %v214_v2, %v213_v1 }
  0xe2   : > { %v216_v4 = vrot.slane %v215_v3, 2 }
  0xe4   : > { %v217_v5 = vadd.f32 %v216_v4, %v215_v3 }
  0xe6   : > { %v218_v6 = vrot.slane %v217_v5, 1 }
  0xe8   : > { %v219_v7 = vadd.f32 %v218_v6, %v217_v5 }
  0xea   : > { %v220_v8 = vmul.f32 0.0009765625, %v219_v7 }
  0xec   : > { %v221_v9 = vsub.f32 %v211_v0, %v220_v8 }
  0xee   : > { %v222_v10 = vmul.f32 %v221_v9, %v221_v9 }
  0xf0   : > { %223 = vadd.xlane.f32.xlu0 %v222_v10 }
 0x179   : > { %v224_v11 = vpop.xlane.xlu0 %223 }
 0x17a   : > { %v225_v12 = vrot.slane %v224_v11, 4 }
 0x17c   : > { %v226_v13 = vadd.f32 %v225_v12, %v224_v11 }
 0x17e   : > { %v227_v14 = vrot.slane %v226_v13, 2 }
 0x180   : > { %v228_v15 = vadd.f32 %v227_v14, %v226_v13 }
 0x182   : > { %v229_v16 = vrot.slane %v228_v15, 1 }
 0x184   : > { %v230_v17 = vadd.f32 %v229_v16, %v228_v15 }
 0x186   : > { %v231_v18 = vmul.f32 0.0009765625, %v230_v17 }
 0x188   : > { %v232_v19 = vadd.f32 1e-12, %v231_v18 }
 0x18a   : > { %426 = vrsqrt.f32 %v232_v19 }
 0x197   : > { %v427_v20 = vpop.eup %426 }
 0x198   : > { %v234_v22 = vmul.f32 %v427_v20, %v221_v9 }
 0x19a   : > { %v236_v24 = vmul.f32 %v235_v21, %v234_v22 }
 0x19c   : > { %v238_v25 = vadd.f32 %v237_v23, %v236_v24 }
 0x19e   : > { %239 = vst [vmem:[%s210_s20] sm:$0xff] %v238_v25 }
 0x19f   : > { %521 = shalt.err (!%p518_p12)
}
 0x1a0   : > { %s522_s11 = scalar_lea.hbm %s252_s28, 128  ;;  %s526_s21 = scalar_lea.hbm %s774_s3, 256 }
 0x1a1   : > { %p523_p3 = scmp.ne.s32.totalorder %s252_s28, %s522_s11  ;;  %p527_p5 = scmp.lt.s32.totalorder %s252_s28, %s774_s3 }
 0x1a2   : > { %p528_p9 = scmp.lt.s32.totalorder %s526_s21, %s522_s11 }
 0x1a3   : > { %p524_p7 = pnand %p523_p3, %p790_p0 }
 0x1a4   : > { %p529_p11 = por %p528_p9, %p527_p5 }
 0x1a5   : > { %p525_p10 = pneg %p524_p7 }
 0x1a7   : > { %p530_p13 = pnand %p529_p11, %p525_p10 }
 0x1a9   : > { %533 = shalt.err (!%p530_p13)
}
 0x1aa   : > { %369 = dma.vmem_to_hbm [thread:$0]  (%p790_p0), %s255_s23, 128, %s252_s28, %s241_s4  }
 0x1ab PF: > { %s266_s29 = sand.u32 1, %s564_s12   ;;  %p791_p1 = scmp.ne.s32.totalorder %s780_s19, 0 }
 0x1ac   : > { %p792_p2 = scmp.ge.s32.totalorder %s576_s15, 2  ;;  %s267_s30 = scalar_lea.sflag [#allocation4], %s266_s29 }
 0x1ae   : > { %p383_p4 = pnand %p792_p2, %p791_p1 }
 0x1b0   : > { %p384_p6 = pneg %p383_p4 }
 0x1b2   : > { %559 = dma.done.wait (%p384_p6), %s267_s30, 128  }
 0x1b3   : > { %561 = vsyncadd (%p384_p6), %s267_s30, 4294967168  ;;  %p17_p8 = scmp.ge.s32.totalorder %s656_s26, 4   ;;  %s793_s12 = smov %s568_s13 }
 0x1b4   : > { %s794_s13 = smov %s572_s14  ;;  %s795_s14 = smov %s683_s8 }
 0x1b5   : > { %s796_s15 = smov %s656_s26  ;;  %19 = sbr.rel (!%p17_p8) target bundleno = 6 (0x6), region = 85 }
 0x1ba   :  { %272 = vsyncpa [#allocation3], 1 }
 0x1bb   :  { %274 = vsyncpa [#allocation3 + $0x1], 1 }
 0x1bc   :  { %275 = vsyncpa [#allocation6], 1 }
 0x1bd   :  { %276 = vsyncpa [#allocation4], 1 }
 0x1be   :  { %278 = vsyncpa [#allocation4 + $0x1], 1 }

</bundles_post_ra>
